<compile_context>
chip_gen: v7x
topology: tpu7x:2x2x1
jax: 0.10.0
libtpu: 0.0.40
codegen_flags: <defaults>
</compile_context>

<pallas_src>
import functools

import jax
import jax.numpy as jnp
from jax import lax
from jax.experimental import pallas as pl
from jax.experimental.pallas import tpu as pltpu

LANE = 128
SUBLANE = 8
MAX_ROW_TILE = 8192        # 8192 x 128 f32 = 4 MiB per input tile
DEFAULT_CHUNK_ROWS = 64    # 8 sub-tiles per fori_loop iteration


def _round_down(x, m):
    return (x // m) * m


def _huber_loss_sum(x, t, delta):
    x = x.astype(jnp.float32)
    t = t.astype(jnp.float32)
    diff = jnp.abs(x - t)
    loss = jnp.where(diff < delta, 0.5 * diff * diff, delta * (diff - 0.5 * delta))
    return jnp.sum(loss)


def _huber_kernel(x_ref, t_ref, o_ref, *, delta, rows, row_tile, blocks_per_core,
                  chunk_rows, sub_chunks):
    c = pl.program_id(0)   # core-split axis ("parallel")
    j = pl.program_id(1)   # serial reduction axis ("arbitrary")

    @pl.when(j == 0)
    def _():
        o_ref[...] = jnp.zeros_like(o_ref)

    # Intended (unclamped) starting row of this grid step. The index_map clamps
    # the DMA block index so it stays in bounds; the iota mask below zeroes the
    # contribution of any row whose intended global index is >= rows (covers
    # both the ragged edge block and fully out-of-range clamped blocks).
    row_start = (c * blocks_per_core + j) * row_tile

    iota = lax.broadcasted_iota(jnp.int32, (chunk_rows, LANE), 0)

    def body(it, acc):
        i0_raw = it * chunk_rows
        i0 = pl.multiple_of(i0_raw, chunk_rows)
        x = x_ref[pl.ds(i0, chunk_rows), :].astype(jnp.float32)
        t = t_ref[pl.ds(i0, chunk_rows), :].astype(jnp.float32)
        diff = jnp.abs(x - t)
        loss = jnp.where(diff < delta, 0.5 * diff * diff,
                         delta * (diff - 0.5 * delta))
        # Zero rows beyond the true row count (garbage data in the overhang).
        thresh = rows - row_start - i0_raw
        loss = jnp.where(iota < thresh, loss, 0.0)
        # (chunk_rows, 128) -> (8, 128): pure elementwise VPU adds across vregs.
        partial = loss.reshape(chunk_rows // SUBLANE, SUBLANE, LANE).sum(axis=0)
        return acc + partial

    acc = lax.fori_loop(
        0, sub_chunks, body,
        jnp.zeros((SUBLANE, LANE), jnp.float32),
        unroll=(sub_chunks <= 8),
    )
    o_ref[...] += acc[None, :, :]


def huber_loss(inp, target, delta=1.0):
    assert inp.shape == target.shape
    total = int(inp.size)
    delta = float(delta)

    x_flat = inp.reshape(-1)
    t_flat = target.reshape(-1)

    rows = total // LANE
    rem = total - rows * LANE

    # <128-element flat remainder: handled in plain JAX (cheaper than padding
    # and re-writing both full inputs in HBM).
    if rem > 0:
        tail_sum = _huber_loss_sum(x_flat[rows * LANE:], t_flat[rows * LANE:], delta)
    else:
        tail_sum = jnp.float32(0.0)

    if rows == 0:
        return tail_sum / jnp.float32(total)

    if rem > 0:
        x_flat = x_flat[: rows * LANE]
        t_flat = t_flat[: rows * LANE]
    x2d = x_flat.reshape(rows, LANE)   # no padding copy when rem == 0
    t2d = t_flat.reshape(rows, LANE)

    # Tile sizing: chunk_rows | row_tile, both multiples of 8 when possible,
    # block row dim never larger than the array row dim (last block may
    # overhang -> masked in-kernel).
    if rows < SUBLANE:
        chunk_rows = rows          # full-dim block (allowed by Pallas)
        row_tile = rows
    else:
        chunk_rows = min(DEFAULT_CHUNK_ROWS, _round_down(rows, SUBLANE))
        row_tile = _round_down(min(MAX_ROW_TILE, rows), chunk_rows)
    sub_chunks = row_tile // chunk_rows

    num_blocks = pl.cdiv(rows, row_tile)
    num_cores = 2 if num_blocks >= 2 else 1   # v7x TC split; 1 avoids waste on tiny inputs
    blocks_per_core = pl.cdiv(num_blocks, num_cores)

    def in_map(c, j):
        # Clamp so the DMA window always starts inside the array; masking in
        # the kernel zeroes any doubly-assigned / out-of-range rows.
        return (jnp.minimum(c * blocks_per_core + j, num_blocks - 1), 0)

    kernel = functools.partial(
        _huber_kernel,
        delta=delta,
        rows=rows,
        row_tile=row_tile,
        blocks_per_core=blocks_per_core,
        chunk_rows=chunk_rows,
        sub_chunks=sub_chunks,
    )

    partials = pl.pallas_call(
        kernel,
        out_shape=jax.ShapeDtypeStruct((num_cores, SUBLANE, LANE), jnp.float32),
        grid_spec=pltpu.PrefetchScalarGridSpec(
            num_scalar_prefetch=0,
            grid=(num_cores, blocks_per_core),
            in_specs=[
                pl.BlockSpec((row_tile, LANE), in_map),
                pl.BlockSpec((row_tile, LANE), in_map),
            ],
            out_specs=pl.BlockSpec((1, SUBLANE, LANE), lambda c, j: (c, 0, 0)),
        ),
        compiler_params=pltpu.CompilerParams(
            dimension_semantics=("parallel", "arbitrary"),
            vmem_limit_bytes=32 << 20,   # footprint + headroom; < v7x 64 MiB physical
        ),
    )(x2d, t2d)

    return (jnp.sum(partials) + tail_sum) / jnp.float32(total)


def _reference(inp, target, delta=1.0):
    x = inp.astype(jnp.float32)
    t = target.astype(jnp.float32)
    diff = jnp.abs(x - t)
    loss = jnp.where(diff < delta, 0.5 * diff * diff, delta * (diff - 0.5 * delta))
    return jnp.mean(loss)


if __name__ == "__main__":
    key = jax.random.PRNGKey(0)
    k1, k2 = jax.random.split(key)

    # NCHW inputs, as the PyTorch module would receive.
    shape = (2, 4, 16, 16)
    inp = jax.random.normal(k1, shape, dtype=jnp.float32)
    target = jax.random.normal(k2, shape, dtype=jnp.float32)

    loss = huber_loss(inp, target, delta=1.0)
    jax.block_until_ready(loss)

    ref = _reference(inp, target, delta=1.0)
    assert jnp.allclose(loss, ref, rtol=1e-5, atol=1e-6), (loss, ref)

    print("KERNEL_OK")
</pallas_src>

<mosaic_0001>
module attributes {stable_mosaic.version = 11 : i64} {
  func.func @_huber_kernel(%arg0: i32, %arg1: i32, %arg2: memref<16x128xf32, #tpu.memory_space<vmem>>, %arg3: memref<16x128xf32, #tpu.memory_space<vmem>>, %arg4: memref<1x8x128xf32, #tpu.memory_space<vmem>>) attributes {dimension_semantics = [#tpu.dimension_semantics<parallel>, #tpu.dimension_semantics<arbitrary>], iteration_bounds = array<i64: 1, 1>, scalar_prefetch = 0 : i64, scratch_operands = 0 : i64, tpu.core_type = #tpu.core_type<tc>, window_params = [{transform_indices = @transform_0, window_bounds = array<i64: 16, 128>}, {transform_indices = @transform_1, window_bounds = array<i64: 16, 128>}, {transform_indices = @transform_2, window_bounds = array<i64: 1, 8, 128>}]} {
    %c0_i32 = arith.constant 0 : i32
    %0 = arith.cmpi eq, %arg1, %c0_i32 : i32
    %1 = arith.extui %0 : i1 to i32
    %c0_i32_0 = arith.constant 0 : i32
    %2 = arith.cmpi ne, %1, %c0_i32_0 : i32
    scf.if %2 {
      %cst_18 = arith.constant 0.000000e+00 : f32
      %39 = vector.broadcast %cst_18 : f32 to vector<1x8x128xf32>
      %c0_19 = arith.constant 0 : index
      %c0_20 = arith.constant 0 : index
      %c0_21 = arith.constant 0 : index
      %40 = vector.load %arg4[%c0_19, %c0_20, %c0_21] : memref<1x8x128xf32, #tpu.memory_space<vmem>>, vector<1x8x128xf32>
      tpu.vector_store %arg4[%c0_19, %c0_20, %c0_21], %39 {strides = array<i32>} : memref<1x8x128xf32, #tpu.memory_space<vmem>>, vector<1x8x128xf32>,
    } else {
    }
    %c1_i32 = arith.constant 1 : i32
    %3 = arith.muli %arg0, %c1_i32 : i32
    %4 = arith.addi %3, %arg1 : i32
    %c16_i32 = arith.constant 16 : i32
    %5 = arith.muli %4, %c16_i32 : i32
    %6 = tpu.iota {dimensions = array<i32: 0>} : vector<16x128xi32>
    %cst = arith.constant 0.000000e+00 : f32
    %7 = vector.broadcast %cst : f32 to vector<8x128xf32>
    %c0_i32_1 = arith.constant 0 : i32
    %c16_i32_2 = arith.constant 16 : i32
    %8 = arith.muli %c0_i32_1, %c16_i32_2 : i32
    %9 = tpu.assume_multiple %8, 16 : i32
    %10 = arith.index_cast %9 : i32 to index
    %c0 = arith.constant 0 : index
    %11 = vector.load %arg2[%10, %c0] : memref<16x128xf32, #tpu.memory_space<vmem>>, vector<16x128xf32>
    %12 = arith.index_cast %9 : i32 to index
    %c0_3 = arith.constant 0 : index
    %13 = vector.load %arg3[%12, %c0_3] : memref<16x128xf32, #tpu.memory_space<vmem>>, vector<16x128xf32>
    %14 = arith.subf %11, %13 : vector<16x128xf32>
    %15 = math.absf %14 : vector<16x128xf32>
    %cst_4 = arith.constant 1.000000e+00 : f32
    %16 = vector.broadcast %cst_4 : f32 to vector<16x128xf32>
    %17 = arith.cmpf olt, %15, %16 : vector<16x128xf32>
    %cst_5 = arith.constant 5.000000e-01 : f32
    %18 = vector.broadcast %cst_5 : f32 to vector<16x128xf32>
    %19 = arith.mulf %18, %15 : vector<16x128xf32>
    %20 = arith.mulf %19, %15 : vector<16x128xf32>
    %cst_6 = arith.constant 5.000000e-01 : f32
    %21 = vector.broadcast %cst_6 : f32 to vector<16x128xf32>
    %22 = arith.subf %15, %21 : vector<16x128xf32>
    %cst_7 = arith.constant 1.000000e+00 : f32
    %23 = vector.broadcast %cst_7 : f32 to vector<16x128xf32>
    %24 = arith.mulf %23, %22 : vector<16x128xf32>
    %25 = arith.select %17, %20, %24 : vector<16x128xi1>, vector<16x128xf32>
    %c16_i32_8 = arith.constant 16 : i32
    %26 = arith.subi %c16_i32_8, %5 : i32
    %27 = arith.subi %26, %8 : i32
    %28 = vector.broadcast %27 : i32 to vector<16x128xi32>
    %29 = arith.cmpi slt, %6, %28 : vector<16x128xi32>
    %cst_9 = arith.constant 0.000000e+00 : f32
    %30 = vector.broadcast %cst_9 : f32 to vector<16x128xf32>
    %31 = arith.select %29, %25, %30 : vector<16x128xi1>, vector<16x128xf32>
    %32 = vector.shape_cast %31 : vector<16x128xf32> to vector<2x8x128xf32>
    %cst_10 = arith.constant dense<0.000000e+00> : vector<8x128xf32>
    %33 = vector.multi_reduction <add>, %32, %cst_10 [0] : vector<2x8x128xf32> to vector<8x128xf32>
    %34 = arith.addf %7, %33 : vector<8x128xf32>
    %c1_i32_11 = arith.constant 1 : i32
    %c0_12 = arith.constant 0 : index
    %c0_13 = arith.constant 0 : index
    %c0_14 = arith.constant 0 : index
    %35 = vector.load %arg4[%c0_12, %c0_13, %c0_14] : memref<1x8x128xf32, #tpu.memory_space<vmem>>, vector<1x8x128xf32>
    %36 = vector.shape_cast %34 : vector<8x128xf32> to vector<1x8x128xf32>
    %37 = arith.addf %35, %36 : vector<1x8x128xf32>
    %c0_15 = arith.constant 0 : index
    %c0_16 = arith.constant 0 : index
    %c0_17 = arith.constant 0 : index
    %38 = vector.load %arg4[%c0_15, %c0_16, %c0_17] : memref<1x8x128xf32, #tpu.memory_space<vmem>>, vector<1x8x128xf32>
    tpu.vector_store %arg4[%c0_15, %c0_16, %c0_17], %37 {strides = array<i32>} : memref<1x8x128xf32, #tpu.memory_space<vmem>>, vector<1x8x128xf32>,
    return
  }
  func.func @transform_0(%arg0: i32, %arg1: i32) -> (i32, i32) {
    %c1_i32 = arith.constant 1 : i32
    %0 = arith.muli %arg0, %c1_i32 : i32
    %1 = arith.addi %0, %arg1 : i32
    %c0_i32 = arith.constant 0 : i32
    %2 = arith.minsi %1, %c0_i32 : i32
    %c0_i32_0 = arith.constant 0 : i32
    %c0_i32_1 = arith.constant 0 : i32
    return %2, %c0_i32_0 : i32, i32
  }
  func.func @transform_1(%arg0: i32, %arg1: i32) -> (i32, i32) {
    %c1_i32 = arith.constant 1 : i32
    %0 = arith.muli %arg0, %c1_i32 : i32
    %1 = arith.addi %0, %arg1 : i32
    %c0_i32 = arith.constant 0 : i32
    %2 = arith.minsi %1, %c0_i32 : i32
    %c0_i32_0 = arith.constant 0 : i32
    %c0_i32_1 = arith.constant 0 : i32
    return %2, %c0_i32_0 : i32, i32
  }
  func.func @transform_2(%arg0: i32, %arg1: i32) -> (i32, i32, i32) {
    %c0_i32 = arith.constant 0 : i32
    %c0_i32_0 = arith.constant 0 : i32
    %c0_i32_1 = arith.constant 0 : i32
    return %arg0, %c0_i32, %c0_i32_0 : i32, i32, i32
  }
}

</mosaic_0001>

<bundles_post_ra>
// kernel: tpu_custom_call.1
= control target key start
LH: loop header
LB: loop body
LE: loop exit
PB: predicated region body
PF: predicated region fallthrough
CT: control target
= control target key end

     0   :  { %7 = vsyncpa [#allocation3], 0  ;;  %s255_s0 = inlined_call_operand.hbm [shape: f32[16,128], index: 0, kind: input, shape index: {}]   ;;  %s256_s1 = inlined_call_operand.hbm [shape: f32[16,128], index: 1, kind: input, shape index: {}]   ;;  %s257_s2 = inlined_call_operand.hbm [shape: f32[1,8,128], index: 2, kind: output, shape index: {}]  }
   0x1   :  { %8 = vsyncpa [#allocation6], 0 }
   0x2   :  { %9 = vsyncpa [#allocation4], 0  ;;  %s199_s9 = smov [#allocation2]   ;;  %s127_s13 = scalar_lea.hbm %s255_s0, 256 }
   0x3   :  { %s21_s10 = sshll.u32 %s199_s9, 4  ;;  %p128_p0 = scmp.ne.s32.totalorder %s255_s0, %s127_s13  ;;  %s22_s10 = int_to_ptr.vmem [resolvable:$true] %s21_s10 }
   0x4   :  { %p131_p1 = scmp.lt.u32.totalorder %s127_s13, %s255_s0 }
   0x6   :  { %p133_p2 = pnand %p131_p1, %p128_p0 }
   0x8   :  { %136 = shalt.err (!%p133_p2)
}
   0x9   :  { %s137_s18 = scalar_lea.vmem %s22_s10, 256  ;;  %p142_p4 = scmp.lt.s32.totalorder %s22_s10, %s22_s10 }
   0xa   :  { %p138_p3 = scmp.ne.s32.totalorder %s22_s10, %s137_s18  ;;  %p143_p5 = scmp.lt.s32.totalorder %s137_s18, %s137_s18 }
   0xc   :  { %p144_p6 = por %p143_p5, %p142_p4 }
   0xe   :  { %p145_p7 = pnand %p144_p6, %p138_p3 }
  0x10   :  { %148 = shalt.err (!%p145_p7)
}
  0x11   :  { %s200_s19 = smov 128   ;;  %s201_s20 = smov 8  }
  0x12   :  { %27 = dma.hbm_to_vmem [thread:$0]  %s255_s0, 256, %s22_s10, [#allocation3], %s200_s19, %s200_s19, %s201_s20  }
  0x13   :  { %s202_s23 = smov [#allocation5]   ;;  %s149_s27 = scalar_lea.hbm %s256_s1, 256 }
  0x14   :  { %s39_s24 = sshll.u32 %s202_s23, 4  ;;  %p150_p8 = scmp.ne.s32.totalorder %s256_s1, %s149_s27  ;;  %s40_s24 = int_to_ptr.vmem [resolvable:$true] %s39_s24 }
  0x15   :  { %p153_p9 = scmp.lt.u32.totalorder %s149_s27, %s256_s1 }
  0x17   :  { %p155_p10 = pnand %p153_p9, %p150_p8 }
  0x19   :  { %158 = shalt.err (!%p155_p10)
}
  0x1a   :  { %s159_s4 = scalar_lea.vmem %s40_s24, 256  ;;  %p164_p12 = scmp.lt.s32.totalorder %s40_s24, %s40_s24 }
  0x1b   :  { %p160_p11 = scmp.ne.s32.totalorder %s40_s24, %s159_s4  ;;  %p165_p13 = scmp.lt.s32.totalorder %s159_s4, %s159_s4 }
  0x1d   :  { %p166_p0 = por %p165_p13, %p164_p12 }
  0x1f   :  { %p167_p1 = pnand %p166_p0, %p160_p11 }
  0x21   :  { %170 = shalt.err (!%p167_p1)
}
  0x22   :  { %45 = dma.hbm_to_vmem [thread:$0]  %s256_s1, 256, %s40_s24, [#allocation6], %s200_s19, %s200_s19, %s201_s20  }
  0x23   :  { %193 = dma.done.wait [#allocation3], 256  }
  0x24   :  { %194 = vsyncadd [#allocation3], 4294967040 }
  0x25   :  { %195 = dma.done.wait [#allocation6], 256  }
  0x26   :  { %196 = vsyncadd [#allocation6], 4294967040  ;;  %v70_v0 = vld [vmem:[#allocation2] sm:$0xff]  ;;  %v71_v1 = vld [vmem:[#allocation2 + $0x8] sm:$0xff]  ;;  %s203_s1 = smov [#allocation7]  }
  0x27   :  { %v72_v2 = vld [vmem:[#allocation5] sm:$0xff]  ;;  %v73_v3 = vld [vmem:[#allocation5 + $0x8] sm:$0xff]  ;;  %s105_s6 = sshll.u32 %s203_s1, 4  ;;  %s106_s6 = int_to_ptr.vmem [resolvable:$true] %s105_s6 }
  0x28   :  { %v74_v4 = vsub.f32 %v70_v0, %v72_v2  ;;  %v75_v5 = vsub.f32 %v71_v1, %v73_v3  ;;  %s171_s7 = scalar_lea.vmem %s106_s6, 128  ;;  %p176_p3 = scmp.lt.s32.totalorder %s106_s6, %s106_s6 }
  0x29   :  { %p172_p2 = scmp.ne.s32.totalorder %s106_s6, %s171_s7  ;;  %p177_p4 = scmp.lt.s32.totalorder %s171_s7, %s171_s7 }
  0x2a   :  { %v76_v6 = vand.u32 2147483647, %v74_v4  ;;  %v77_v7 = vand.u32 2147483647, %v75_v5 }
  0x2b   :  { %p178_p5 = por %p177_p4, %p176_p3 }
  0x2c   :  { %v80_v8 = vmul.f32 0.5, %v76_v6  ;;  %v119_v9 = vadd.f32 -0.5, %v76_v6  ;;  %vm78_vm0 = vcmp.lt.f32.partialorder %v76_v6, 1.0  ;;  %v81_v10 = vmul.f32 0.5, %v77_v7 }
  0x2d   :  { %v120_v11 = vadd.f32 -0.5, %v77_v7  ;;  %vm79_vm1 = vcmp.lt.f32.partialorder %v77_v7, 1.0  ;;  %p179_p6 = pnand %p178_p5, %p172_p2 }
  0x2e   :  { %v82_v12 = vmul.f32 %v80_v8, %v76_v6  ;;  %v83_v13 = vmul.f32 %v81_v10, %v77_v7 }
  0x30   :  { %v86_v14 = vsel %vm78_vm0, %v82_v12, %v119_v9  ;;  %v87_v15 = vsel %vm79_vm1, %v83_v13, %v120_v11 }
  0x31   :  { %v94_v16 = vadd.f32 %v87_v15, %v86_v14 }
  0x33   :  { %98 = vst [vmem:[#allocation7] sm:$0xff] %v94_v16 }
  0x34   :  { %182 = shalt.err (!%p179_p6)
}
  0x35   :  { %s183_s10 = scalar_lea.hbm %s257_s2, 128 }
  0x36   :  { %p184_p7 = scmp.ne.s32.totalorder %s257_s2, %s183_s10  ;;  %p187_p8 = scmp.lt.u32.totalorder %s183_s10, %s257_s2 }
  0x38   :  { %p189_p9 = pnand %p187_p8, %p184_p7 }
  0x3a   :  { %192 = shalt.err (!%p189_p9)
}
  0x3b   :  { %108 = dma.vmem_to_hbm [thread:$0]  %s106_s6, 128, %s257_s2, [#allocation4]  }
  0x3c   :  { %197 = dma.done.wait [#allocation4], 128  }
  0x3d   :  { %198 = vsyncadd [#allocation4], 4294967168 }
  0x3e   :  { %112 = vsyncpa [#allocation3], 1 }
  0x3f   :  { %113 = vsyncpa [#allocation6], 1 }
  0x40   :  { %114 = vsyncpa [#allocation4], 1 }

</bundles_post_ra>
